<compile_context>
chip_gen: v5e
topology: v5e:2x2
jax: 0.10.0
libtpu: 0.0.40
codegen_flags: <defaults>
</compile_context>

<pallas_src>
import jax
import jax.numpy as jnp
from jax.experimental import pallas as pl
from jax.experimental.pallas import tpu as pltpu


# ~8 MiB per tile buffer; with in + out, double-buffered, that's ~32 MiB VMEM:
# inside v7x's 64 MiB-per-TC physical VMEM and v5e/v6e's 128 MiB.
_TILE_BYTES = 8 * 1024 * 1024
_VMEM_LIMIT_BYTES = 48 * 1024 * 1024
# Below this the pallas_call fixed cost dominates; let XLA fuse the multiply.
_MIN_PALLAS_BYTES = 1 * 1024 * 1024

# Native sublane tiling per element size (f32 -> 8, bf16/f16 -> 16, int8/fp8 -> 32).
_SUBLANE = {1: 32, 2: 16, 4: 8, 8: 8}


def _scale_kernel(s_ref, x_ref, o_ref):
    # s_ref: (1,) f32 scalar parameter in SMEM; x_ref/o_ref: (tile_m, lane) VMEM.
    o_ref[...] = (x_ref[...] * s_ref[0]).astype(o_ref.dtype)


def scale_layer(x, scale, *, min_pallas_bytes=_MIN_PALLAS_BYTES):
    """y = x * scale (ScaleLayer.forward). `scale` is a 0-d parameter.

    NOTE: output dtype is x.dtype (the scalar is folded into x's precision),
    which differs from PyTorch type promotion when x is lower precision than
    the parameter (e.g. bf16 x, f32 param). Documented & intentional.
    """
    dtype = x.dtype
    total = int(x.size)                         # static Python int
    itemsize = jnp.dtype(dtype).itemsize
    s_same = jnp.asarray(scale, dtype=dtype)    # for the fused-XLA fallback

    # ---- fast path: tiny tensors (pallas fixed cost dominates) -------------
    if total * itemsize < min_pallas_bytes:
        return x * s_same

    # ---- lane-dense slab layout ---------------------------------------------
    # Widest lane count that divides the total exactly (no padding, no extra
    # HBM copies). If nothing >=128 divides, fall back to plain XLA: a fused
    # scalar multiply is already at HBM roofline, and any pad/concat repack
    # would add full-tensor HBM passes (the single worst cost here).
    lane = next((c for c in (1024, 512, 256, 128) if total % c == 0), None)
    if lane is None:
        return x * s_same

    num_rows = total // lane
    sublane = _SUBLANE.get(itemsize, 8)

    # ---- row tile: from the VMEM budget only (no divisibility constraint) ---
    budget_rows = max(sublane, (_TILE_BYTES // (lane * itemsize)) // sublane * sublane)
    # Keep >=2 grid steps (roughly balanced) when there is enough work so the
    # v7x megacore can shard steps across its two TensorCores.
    half_rows = pl.cdiv(pl.cdiv(num_rows, 2), sublane) * sublane
    tile_m = max(sublane, min(budget_rows, half_rows))
    if tile_m >= num_rows:
        tile_m = num_rows               # single full-extent block (tiny inputs)

    grid = (pl.cdiv(num_rows, tile_m),)  # boundary block (if any) is masked

    x2d = x.reshape(num_rows, lane)      # free re-view of a contiguous array
    s32 = jnp.asarray(scale, dtype=jnp.float32).reshape((1,))  # f32 scalar in SMEM

    out2d = pl.pallas_call(
        _scale_kernel,
        out_shape=jax.ShapeDtypeStruct((num_rows, lane), dtype),
        grid_spec=pltpu.PrefetchScalarGridSpec(
            num_scalar_prefetch=0,
            grid=grid,
            in_specs=[
                # scalar parameter lives in SMEM, same block every step
                pl.BlockSpec(memory_space=pltpu.SMEM),
                # lane-dense input tile
                pl.BlockSpec((tile_m, lane), lambda i: (i, 0)),
            ],
            out_specs=pl.BlockSpec((tile_m, lane), lambda i: (i, 0)),
        ),
        compiler_params=pltpu.CompilerParams(
            dimension_semantics=("parallel",),
            vmem_limit_bytes=_VMEM_LIMIT_BYTES,
        ),
        cost_estimate=pl.CostEstimate(
            flops=total,
            transcendentals=0,
            bytes_accessed=2 * total * itemsize,
        ),
    )(s32, x2d)

    return out2d.reshape(x.shape)


if __name__ == "__main__":
    key = jax.random.PRNGKey(0)
    # Small NCHW activation consistent with the denoising net's conv stack.
    x = jax.random.normal(key, (2, 4, 16, 16), dtype=jnp.float32)
    scale_param = jnp.float32(0.5)
    y_ref = x * scale_param

    # Force the Pallas path even at this small size so the kernel is exercised.
    y = scale_layer(x, scale_param, min_pallas_bytes=0)
    jax.block_until_ready(y)
    assert y.shape == x.shape and y.dtype == x.dtype
    assert jnp.allclose(y, y_ref, atol=1e-6, rtol=1e-6)

    # Default path: tiny tensor short-circuits to the fused XLA multiply.
    y_fast = scale_layer(x, scale_param)
    jax.block_until_ready(y_fast)
    assert jnp.allclose(y_fast, y_ref, atol=1e-6, rtol=1e-6)

    # Lane-indivisible total -> documented XLA fallback, still correct.
    x_odd = jax.random.normal(key, (3, 5, 7), dtype=jnp.float32)
    y_odd = scale_layer(x_odd, scale_param, min_pallas_bytes=0)
    jax.block_until_ready(y_odd)
    assert jnp.allclose(y_odd, x_odd * scale_param, atol=1e-6, rtol=1e-6)

    print("KERNEL_OK")
</pallas_src>

<mosaic_0001>
module attributes {stable_mosaic.version = 11 : i64} {
  func.func @_scale_kernel(%arg0: i32, %arg1: memref<1xf32, #tpu.memory_space<smem>>, %arg2: memref<2x1024xf32, #tpu.memory_space<vmem>>, %arg3: memref<2x1024xf32, #tpu.memory_space<vmem>>) attributes {dimension_semantics = [#tpu.dimension_semantics<parallel>], iteration_bounds = array<i64: 1>, scalar_prefetch = 0 : i64, scratch_operands = 0 : i64, tpu.core_type = #tpu.core_type<tc>, window_params = [{transform_indices = @transform_0, window_bounds = array<i64: 1>}, {transform_indices = @transform_1, window_bounds = array<i64: 2, 1024>}, {transform_indices = @transform_2, window_bounds = array<i64: 2, 1024>}]} {
    %c0 = arith.constant 0 : index
    %c0_0 = arith.constant 0 : index
    %0 = vector.load %arg2[%c0, %c0_0] : memref<2x1024xf32, #tpu.memory_space<vmem>>, vector<2x1024xf32>
    %c0_1 = arith.constant 0 : index
    %1 = memref.load %arg1[%c0_1] : memref<1xf32, #tpu.memory_space<smem>>
    %2 = vector.broadcast %1 : f32 to vector<2x1024xf32>
    %3 = arith.mulf %0, %2 : vector<2x1024xf32>
    %c0_2 = arith.constant 0 : index
    %c0_3 = arith.constant 0 : index
    %4 = vector.load %arg3[%c0_2, %c0_3] : memref<2x1024xf32, #tpu.memory_space<vmem>>, vector<2x1024xf32>
    tpu.vector_store %arg3[%c0_2, %c0_3], %3 {strides = array<i32>} : memref<2x1024xf32, #tpu.memory_space<vmem>>, vector<2x1024xf32>,
    return
  }
  func.func @transform_0(%arg0: i32) -> i32 {
    %c0_i32 = arith.constant 0 : i32
    %c0_i32_0 = arith.constant 0 : i32
    return %c0_i32 : i32
  }
  func.func @transform_1(%arg0: i32) -> (i32, i32) {
    %c0_i32 = arith.constant 0 : i32
    %c0_i32_0 = arith.constant 0 : i32
    return %arg0, %c0_i32 : i32, i32
  }
  func.func @transform_2(%arg0: i32) -> (i32, i32) {
    %c0_i32 = arith.constant 0 : i32
    %c0_i32_0 = arith.constant 0 : i32
    return %arg0, %c0_i32 : i32, i32
  }
}

</mosaic_0001>

<bundles_post_ra>
// kernel: tpu_custom_call.1
= control target key start
LH: loop header
LB: loop body
LE: loop exit
PB: predicated region body
PF: predicated region fallthrough
CT: control target
= control target key end

     0   :  { %8 = vsyncpa [#allocation4], 0  ;;  %s132_s0 = inlined_call_operand.<no memory space> [shape: f32[1], index: 0, kind: input, shape index: {}]   ;;  %s133_s1 = inlined_call_operand.hbm [shape: f32[2,1024], index: 1, kind: input, shape index: {}]   ;;  %s134_s2 = inlined_call_operand.hbm [shape: f32[2,1024], index: 2, kind: output, shape index: {}]  }
   0x1   :  { %9 = vsyncpa [#allocation5], 0  ;;  %s17_s11 = sshll.u32 %s133_s1, 4  ;;  %s106_s12 = smov [#allocation3]   ;;  %s18_s11 = int_to_ptr.hbm [resolvable:$true] %s17_s11 }
   0x2   :  { %s19_s13 = sshll.u32 %s106_s12, 4  ;;  %s20_s13 = int_to_ptr.vmem [resolvable:$true] %s19_s13 }
   0x3   :  { %22 = dma.hbm_to_vmem [thread:$0]  %s18_s11, 256, %s20_s13, [#allocation4]  }
   0x4   :  { %102 = dma.done.wait [#allocation4], 256  }
   0x5   :  { %103 = vsyncadd [#allocation4], 4294967040  ;;  %v30_v0 = vstv %s132_s0  ;;  %s107_s16 = smov [#allocation6]   ;;  %s42_s20 = sshll.u32 %s134_s2, 4  ;;  %v27_v1 = vld [vmem:[#allocation3] sm:$0xff]  ;;  %v28_v2 = vld [vmem:[#allocation3 + $0x8] sm:$0xff]  ;;  %s43_s20 = int_to_ptr.hbm [resolvable:$true] %s42_s20 }
   0x6   :  { %s40_s17 = sshll.u32 %s107_s16, 4  ;;  %v31_v3 = vmul.f32 %v30_v0, %v27_v1  ;;  %v32_v4 = vmul.f32 %v30_v0, %v28_v2  ;;  %s41_s17 = int_to_ptr.vmem [resolvable:$true] %s40_s17 }
   0x8   :  { %33 = vst [vmem:[#allocation6] sm:$0xff] %v31_v3 }
   0x9   :  { %34 = vst [vmem:[#allocation6 + $0x8] sm:$0xff] %v32_v4 }
   0xa   :  { %45 = dma.vmem_to_hbm [thread:$0]  %s41_s17, 256, %s43_s20, [#allocation5]  }
   0xb   :  { %104 = dma.done.wait [#allocation5], 256  }
   0xc   :  { %105 = vsyncadd [#allocation5], 4294967040 }
   0xd   :  { %50 = vsyncpa [#allocation4], 1 }
   0xe   :  { %51 = vsyncpa [#allocation5], 1 }

</bundles_post_ra>
